<compile_context>
chip_gen: v5e
topology: v5e:2x2
jax: 0.10.0
libtpu: 0.0.40
codegen_flags: <defaults>
</compile_context>

<pallas_src>
import math

import jax
import jax.numpy as jnp
from jax import lax
from jax.experimental import pallas as pl
from jax.experimental.pallas import tpu as pltpu

# ---- problem sizes (small, consistent with the module) ----
S, B, D, H, DFF = 8, 2, 32, 4, 64          # seq, batch, d_model, heads, d_ff
DK = D // H                                 # 8
SB = S * B                                  # 16 tokens
BHS = H * SB                                # 64 (token, head) pairs
SCALE = 1.0 / math.sqrt(DK)
EPS = 1e-5                                  # nn.LayerNorm default eps
NEG_INF = -1e30                             # finite "masked" value (avoids inf-inf NaN)


def _layernorm(x, gamma, beta):
    # E[x^2] - mean^2: the two reductions are independent (overlap on the XLU ports).
    mu = jnp.mean(x, axis=-1, keepdims=True)
    ex2 = jnp.mean(x * x, axis=-1, keepdims=True)
    var = jnp.maximum(ex2 - mu * mu, 0.0)
    return (x - mu) * lax.rsqrt(var + EPS) * gamma + beta


# ------------------ fused whole-layer kernel ------------------
def transformer_layer_kernel(x_ref, bias_ref,
                             g1_ref, b1_ref, wqkv_ref, bqkv_ref,
                             wo_ref, bo_ref, g2_ref, b2_ref,
                             w1_ref, bf1_ref, w2_ref, bf2_ref,
                             o_ref):
    x = x_ref[...]                                            # [SB, D] f32, rows in (s, b) order

    # --- LayerNorm + fused Q/K/V projection (single bf16 MXU pass, f32 accumulation) ---
    z = _layernorm(x, g1_ref[...], b1_ref[...])
    qkv = jnp.dot(z.astype(jnp.bfloat16), wqkv_ref[...],
                  preferred_element_type=jnp.float32) + bqkv_ref[...]     # [SB, 3D] f32

    # --- stack all B*H heads into one block-diagonal attention problem ---
    # Stacked row order i = h*(S*B) + s*B + b; bias_ref (precomputed) already encodes BOTH the
    # user mask and -1e30 on every cross-(head,batch) entry for this ordering, so one softmax
    # over the 64-wide rows is exactly H*B independent per-head softmaxes.
    qs = jnp.concatenate([qkv[:, h * DK:(h + 1) * DK] for h in range(H)], axis=0)          # [BHS, DK]
    ks = jnp.concatenate([qkv[:, D + h * DK:D + (h + 1) * DK] for h in range(H)], axis=0)  # [BHS, DK]
    vs = jnp.concatenate([qkv[:, 2 * D + h * DK:2 * D + (h + 1) * DK] for h in range(H)], axis=0)

    s = lax.dot_general(qs.astype(jnp.bfloat16), ks.astype(jnp.bfloat16),
                        (((1,), (1,)), ((), ())),
                        preferred_element_type=jnp.float32)    # [BHS, BHS] = q @ k^T (all heads)
    s = s * SCALE + bias_ref[...]
    mx = jnp.max(s, axis=-1, keepdims=True)
    e = jnp.exp(s - mx)
    inv = pl.reciprocal(jnp.sum(e, axis=-1, keepdims=True), approx=True)   # EUP slot
    p = e * inv
    av = jnp.dot(p.astype(jnp.bfloat16), vs.astype(jnp.bfloat16),
                 preferred_element_type=jnp.float32)            # [BHS, DK]

    # un-stack: rows back to (s, b) order, heads back onto the feature (lane) dim
    a = jnp.concatenate([av[h * SB:(h + 1) * SB, :] for h in range(H)], axis=1)   # [SB, D]

    # --- output projection + residual ---
    x1 = x + jnp.dot(a.astype(jnp.bfloat16), wo_ref[...],
                     preferred_element_type=jnp.float32) + bo_ref[...]

    # --- LayerNorm + feed-forward (ReLU) + residual ---
    z2 = _layernorm(x1, g2_ref[...], b2_ref[...])
    hdn = jnp.maximum(
        jnp.dot(z2.astype(jnp.bfloat16), w1_ref[...],
                preferred_element_type=jnp.float32) + bf1_ref[...], 0.0)
    o_ref[...] = x1 + jnp.dot(hdn.astype(jnp.bfloat16), w2_ref[...],
                              preferred_element_type=jnp.float32) + bf2_ref[...]


# ------------------ wrapper ------------------
def transformer_layer(x, mask, params):
    """x: [S, B, D] f32 (native layout); mask: [S or 1, S, B or 1] f32 (nonzero = attend)."""
    p = params
    xf = x.reshape(SB, D)                       # contiguous reshape -> no HBM transpose

    # Single small fusion: additive bias for the block-diagonal all-heads attention.
    # bias[i, j] = 0 iff rows i, j share (head, batch) AND mask allows, else -1e30.
    mask_full = jnp.broadcast_to(mask, (S, S, B))
    idx = jnp.arange(BHS)
    h_idx = idx // SB
    s_idx = (idx % SB) // B
    b_idx = idx % B
    same_blk = (h_idx[:, None] == h_idx[None, :]) & (b_idx[:, None] == b_idx[None, :])
    mvals = mask_full[s_idx[:, None], s_idx[None, :], b_idx[:, None]]
    bias = jnp.where(same_blk & (mvals != 0.0), 0.0, NEG_INF).astype(jnp.float32)

    vmem = pl.BlockSpec(memory_space=pltpu.MemorySpace.VMEM)
    yf = pl.pallas_call(
        transformer_layer_kernel,
        out_shape=jax.ShapeDtypeStruct((SB, D), jnp.float32),
        in_specs=[vmem] * 14,
        out_specs=vmem,
    )(xf, bias,
      p['ln1_g'], p['ln1_b'], p['wqkv_b'], p['bqkv'],
      p['wo_b'], p['bo'], p['ln2_g'], p['ln2_b'],
      p['w1_b'], p['b1'], p['w2_b'], p['b2'])

    return yf.reshape(S, B, D)                  # contiguous reshape -> free


# ------------------ deterministic parameter init ------------------
def init_params(key):
    def linear(k, din, dout):
        k1, k2 = jax.random.split(k)
        bound = 1.0 / math.sqrt(din)
        w = jax.random.uniform(k1, (din, dout), jnp.float32, -bound, bound)   # stored [in, out]
        b = jax.random.uniform(k2, (1, dout), jnp.float32, -bound, bound)
        return w, b

    ks = jax.random.split(key, 8)
    p = {}
    p['ln1_g'] = jnp.ones((1, D), jnp.float32)
    p['ln1_b'] = jnp.zeros((1, D), jnp.float32)
    p['wq'], p['bq'] = linear(ks[0], D, D)
    p['wk'], p['bk'] = linear(ks[1], D, D)
    p['wv'], p['bv'] = linear(ks[2], D, D)
    p['wo'], p['bo'] = linear(ks[3], D, D)
    p['ln2_g'] = jnp.ones((1, D), jnp.float32)
    p['ln2_b'] = jnp.zeros((1, D), jnp.float32)
    p['w1'], p['b1'] = linear(ks[4], D, DFF)
    p['w2'], p['b2'] = linear(ks[5], DFF, D)
    # fused QKV weights for a single lane-dense MXU pass
    p['wqkv'] = jnp.concatenate([p['wq'], p['wk'], p['wv']], axis=1)          # [D, 3D]
    p['bqkv'] = jnp.concatenate([p['bq'], p['bk'], p['bv']], axis=1)          # [1, 3D]
    # bf16 weight copies used by the kernel (MXU is bf16-native; f32 would go multi-pass)
    p['wqkv_b'] = p['wqkv'].astype(jnp.bfloat16)
    p['wo_b'] = p['wo'].astype(jnp.bfloat16)
    p['w1_b'] = p['w1'].astype(jnp.bfloat16)
    p['w2_b'] = p['w2'].astype(jnp.bfloat16)
    return p


# ------------------ pure-JAX reference (mirrors the PyTorch forward, eval mode) ------------------
def reference(x, mask3, p):
    def ln(t, g, b):
        mu = jnp.mean(t, axis=-1, keepdims=True)
        var = jnp.mean((t - mu) ** 2, axis=-1, keepdims=True)
        return (t - mu) / jnp.sqrt(var + EPS) * g + b

    z = ln(x, p['ln1_g'][0], p['ln1_b'][0])
    q = (z @ p['wq'] + p['bq'][0]).reshape(S, B, H, DK)
    k = (z @ p['wk'] + p['bk'][0]).reshape(S, B, H, DK)
    v = (z @ p['wv'] + p['bv'][0]).reshape(S, B, H, DK)
    scores = jnp.einsum('ibhd,jbhd->ijbh', q, k) * SCALE
    scores = jnp.where(mask3[..., None] == 0.0, -jnp.inf, scores)
    attn = jax.nn.softmax(scores, axis=1)
    o = jnp.einsum('ijbh,jbhd->ibhd', attn, v).reshape(S, B, D)
    x1 = x + (o @ p['wo'] + p['bo'][0])
    z2 = ln(x1, p['ln2_g'][0], p['ln2_b'][0])
    ff = jax.nn.relu(z2 @ p['w1'] + p['b1'][0]) @ p['w2'] + p['b2'][0]
    return x1 + ff


if __name__ == "__main__":
    key = jax.random.PRNGKey(0)
    kx, kp = jax.random.split(key)
    x = jax.random.normal(kx, (S, B, D), dtype=jnp.float32)
    # causal mask, shape [S, S, 1] (broadcast over batch, as the PyTorch module allows)
    mask = jnp.tril(jnp.ones((S, S), jnp.float32))[:, :, None]
    params = init_params(kp)

    fwd = jax.jit(transformer_layer)
    out = jax.block_until_ready(fwd(x, mask, params))
    assert out.shape == (S, B, D)

    ref = reference(x, jnp.broadcast_to(mask, (S, S, B)), params)
    if not jnp.allclose(out, ref, atol=5e-2, rtol=5e-2):
        raise SystemExit(
            f"mismatch vs reference: max abs diff = {float(jnp.max(jnp.abs(out - ref)))}")
    print("KERNEL_OK")
</pallas_src>

<mosaic_0001>
module attributes {stable_mosaic.version = 11 : i64} {
  func.func @transformer_layer_kernel(%arg0: memref<16x32xf32, #tpu.memory_space<vmem>>, %arg1: memref<64x64xf32, #tpu.memory_space<vmem>>, %arg2: memref<1x32xf32, #tpu.memory_space<vmem>>, %arg3: memref<1x32xf32, #tpu.memory_space<vmem>>, %arg4: memref<32x96xbf16, #tpu.memory_space<vmem>>, %arg5: memref<1x96xf32, #tpu.memory_space<vmem>>, %arg6: memref<32x32xbf16, #tpu.memory_space<vmem>>, %arg7: memref<1x32xf32, #tpu.memory_space<vmem>>, %arg8: memref<1x32xf32, #tpu.memory_space<vmem>>, %arg9: memref<1x32xf32, #tpu.memory_space<vmem>>, %arg10: memref<32x64xbf16, #tpu.memory_space<vmem>>, %arg11: memref<1x64xf32, #tpu.memory_space<vmem>>, %arg12: memref<64x32xbf16, #tpu.memory_space<vmem>>, %arg13: memref<1x32xf32, #tpu.memory_space<vmem>>, %arg14: memref<16x32xf32, #tpu.memory_space<vmem>>) attributes {dimension_semantics = [], scalar_prefetch = 0 : i64, scratch_operands = 0 : i64, tpu.core_type = #tpu.core_type<tc>} {
    %c0 = arith.constant 0 : index
    %c0_0 = arith.constant 0 : index
    %0 = vector.load %arg0[%c0, %c0_0] : memref<16x32xf32, #tpu.memory_space<vmem>>, vector<16x32xf32>
    %c0_1 = arith.constant 0 : index
    %c0_2 = arith.constant 0 : index
    %1 = vector.load %arg2[%c0_1, %c0_2] : memref<1x32xf32, #tpu.memory_space<vmem>>, vector<1x32xf32>
    %c0_3 = arith.constant 0 : index
    %c0_4 = arith.constant 0 : index
    %2 = vector.load %arg3[%c0_3, %c0_4] : memref<1x32xf32, #tpu.memory_space<vmem>>, vector<1x32xf32>
    %cst = arith.constant dense<0.000000e+00> : vector<16xf32>
    %3 = vector.multi_reduction <add>, %0, %cst [1] : vector<16x32xf32> to vector<16xf32>
    %4 = vector.shape_cast %3 : vector<16xf32> to vector<16x1xf32>
    %cst_5 = arith.constant 3.200000e+01 : f32
    %5 = vector.broadcast %cst_5 : f32 to vector<16x1xf32>
    %6 = arith.divf %4, %5 : vector<16x1xf32>
    %7 = arith.mulf %0, %0 : vector<16x32xf32>
    %cst_6 = arith.constant dense<0.000000e+00> : vector<16xf32>
    %8 = vector.multi_reduction <add>, %7, %cst_6 [1] : vector<16x32xf32> to vector<16xf32>
    %9 = vector.shape_cast %8 : vector<16xf32> to vector<16x1xf32>
    %cst_7 = arith.constant 3.200000e+01 : f32
    %10 = vector.broadcast %cst_7 : f32 to vector<16x1xf32>
    %11 = arith.divf %9, %10 : vector<16x1xf32>
    %12 = arith.mulf %6, %6 : vector<16x1xf32>
    %13 = arith.subf %11, %12 : vector<16x1xf32>
    %cst_8 = arith.constant 0.000000e+00 : f32
    %14 = vector.broadcast %cst_8 : f32 to vector<16x1xf32>
    %15 = arith.maximumf %13, %14 : vector<16x1xf32>
    %16 = vector.broadcast %6 : vector<16x1xf32> to vector<16x32xf32>
    %17 = arith.subf %0, %16 : vector<16x32xf32>
    %cst_9 = arith.constant 9.99999974E-6 : f32
    %18 = vector.broadcast %cst_9 : f32 to vector<16x1xf32>
    %19 = arith.addf %15, %18 : vector<16x1xf32>
    %20 = math.rsqrt %19 : vector<16x1xf32>
    %21 = vector.broadcast %20 : vector<16x1xf32> to vector<16x32xf32>
    %22 = arith.mulf %17, %21 : vector<16x32xf32>
    %23 = vector.broadcast %1 : vector<1x32xf32> to vector<16x32xf32>
    %24 = arith.mulf %22, %23 : vector<16x32xf32>
    %25 = vector.broadcast %2 : vector<1x32xf32> to vector<16x32xf32>
    %26 = arith.addf %24, %25 : vector<16x32xf32>
    %27 = arith.truncf %26 : vector<16x32xf32> to vector<16x32xbf16>
    %c0_10 = arith.constant 0 : index
    %c0_11 = arith.constant 0 : index
    %28 = vector.load %arg4[%c0_10, %c0_11] : memref<32x96xbf16, #tpu.memory_space<vmem>>, vector<32x96xbf16>
    %cst_12 = arith.constant dense<0.000000e+00> : vector<16x96xf32>
    %29 = tpu.matmul %27, %28, %cst_12 {dimension_numbers = #tpu.dot_dimension_numbers<[1], [0], [0], [1], [0, 0, 1, 1], [], []>} : vector<16x32xbf16>, vector<32x96xbf16>, vector<16x96xf32> -> vector<16x96xf32>
    %c0_13 = arith.constant 0 : index
    %c0_14 = arith.constant 0 : index
    %30 = vector.load %arg5[%c0_13, %c0_14] : memref<1x96xf32, #tpu.memory_space<vmem>>, vector<1x96xf32>
    %31 = vector.broadcast %30 : vector<1x96xf32> to vector<16x96xf32>
    %32 = arith.addf %29, %31 : vector<16x96xf32>
    %33 = vector.extract_strided_slice %32 {offsets = [0, 0], sizes = [16, 8], strides = [1, 1]} : vector<16x96xf32> to vector<16x8xf32>
    %34 = vector.extract_strided_slice %32 {offsets = [0, 8], sizes = [16, 8], strides = [1, 1]} : vector<16x96xf32> to vector<16x8xf32>
    %35 = vector.extract_strided_slice %32 {offsets = [0, 16], sizes = [16, 8], strides = [1, 1]} : vector<16x96xf32> to vector<16x8xf32>
    %36 = vector.extract_strided_slice %32 {offsets = [0, 24], sizes = [16, 8], strides = [1, 1]} : vector<16x96xf32> to vector<16x8xf32>
    %37 = tpu.concatenate %33, %34, %35, %36 in 0 : vector<16x8xf32>, vector<16x8xf32>, vector<16x8xf32>, vector<16x8xf32> -> vector<64x8xf32>
    %38 = vector.extract_strided_slice %32 {offsets = [0, 32], sizes = [16, 8], strides = [1, 1]} : vector<16x96xf32> to vector<16x8xf32>
    %39 = vector.extract_strided_slice %32 {offsets = [0, 40], sizes = [16, 8], strides = [1, 1]} : vector<16x96xf32> to vector<16x8xf32>
    %40 = vector.extract_strided_slice %32 {offsets = [0, 48], sizes = [16, 8], strides = [1, 1]} : vector<16x96xf32> to vector<16x8xf32>
    %41 = vector.extract_strided_slice %32 {offsets = [0, 56], sizes = [16, 8], strides = [1, 1]} : vector<16x96xf32> to vector<16x8xf32>
    %42 = tpu.concatenate %38, %39, %40, %41 in 0 : vector<16x8xf32>, vector<16x8xf32>, vector<16x8xf32>, vector<16x8xf32> -> vector<64x8xf32>
    %43 = vector.extract_strided_slice %32 {offsets = [0, 64], sizes = [16, 8], strides = [1, 1]} : vector<16x96xf32> to vector<16x8xf32>
    %44 = vector.extract_strided_slice %32 {offsets = [0, 72], sizes = [16, 8], strides = [1, 1]} : vector<16x96xf32> to vector<16x8xf32>
    %45 = vector.extract_strided_slice %32 {offsets = [0, 80], sizes = [16, 8], strides = [1, 1]} : vector<16x96xf32> to vector<16x8xf32>
    %46 = vector.extract_strided_slice %32 {offsets = [0, 88], sizes = [16, 8], strides = [1, 1]} : vector<16x96xf32> to vector<16x8xf32>
    %47 = tpu.concatenate %43, %44, %45, %46 in 0 : vector<16x8xf32>, vector<16x8xf32>, vector<16x8xf32>, vector<16x8xf32> -> vector<64x8xf32>
    %48 = arith.truncf %37 : vector<64x8xf32> to vector<64x8xbf16>
    %49 = arith.truncf %42 : vector<64x8xf32> to vector<64x8xbf16>
    %cst_15 = arith.constant dense<0.000000e+00> : vector<64x64xf32>
    %50 = tpu.matmul %48, %49, %cst_15 {dimension_numbers = #tpu.dot_dimension_numbers<[1], [1], [0], [0], [0, 0, 1, 0], [], []>} : vector<64x8xbf16>, vector<64x8xbf16>, vector<64x64xf32> -> vector<64x64xf32>
    %cst_16 = arith.constant 0.353553385 : f32
    %51 = vector.broadcast %cst_16 : f32 to vector<64x64xf32>
    %52 = arith.mulf %50, %51 : vector<64x64xf32>
    %c0_17 = arith.constant 0 : index
    %c0_18 = arith.constant 0 : index
    %53 = vector.load %arg1[%c0_17, %c0_18] : memref<64x64xf32, #tpu.memory_space<vmem>>, vector<64x64xf32>
    %54 = arith.addf %52, %53 : vector<64x64xf32>
    %cst_19 = arith.constant dense<0xFF800000> : vector<64xf32>
    %55 = vector.multi_reduction <maximumf>, %54, %cst_19 [1] : vector<64x64xf32> to vector<64xf32>
    %56 = vector.shape_cast %55 : vector<64xf32> to vector<64x1xf32>
    %57 = vector.broadcast %56 : vector<64x1xf32> to vector<64x64xf32>
    %58 = arith.subf %54, %57 : vector<64x64xf32>
    %59 = math.exp %58 : vector<64x64xf32>
    %cst_20 = arith.constant dense<0.000000e+00> : vector<64xf32>
    %60 = vector.multi_reduction <add>, %59, %cst_20 [1] : vector<64x64xf32> to vector<64xf32>
    %61 = vector.shape_cast %60 : vector<64xf32> to vector<64x1xf32>
    %62 = tpu.reciprocal %61 {approx = true} : vector<64x1xf32> -> vector<64x1xf32>
    %63 = vector.broadcast %62 : vector<64x1xf32> to vector<64x64xf32>
    %64 = arith.mulf %59, %63 : vector<64x64xf32>
    %65 = arith.truncf %64 : vector<64x64xf32> to vector<64x64xbf16>
    %66 = arith.truncf %47 : vector<64x8xf32> to vector<64x8xbf16>
    %cst_21 = arith.constant dense<0.000000e+00> : vector<64x8xf32>
    %67 = tpu.matmul %65, %66, %cst_21 {dimension_numbers = #tpu.dot_dimension_numbers<[1], [0], [0], [1], [0, 0, 1, 1], [], []>} : vector<64x64xbf16>, vector<64x8xbf16>, vector<64x8xf32> -> vector<64x8xf32>
    %68 = vector.extract_strided_slice %67 {offsets = [0, 0], sizes = [16, 8], strides = [1, 1]} : vector<64x8xf32> to vector<16x8xf32>
    %69 = vector.extract_strided_slice %67 {offsets = [16, 0], sizes = [16, 8], strides = [1, 1]} : vector<64x8xf32> to vector<16x8xf32>
    %70 = vector.extract_strided_slice %67 {offsets = [32, 0], sizes = [16, 8], strides = [1, 1]} : vector<64x8xf32> to vector<16x8xf32>
    %71 = vector.extract_strided_slice %67 {offsets = [48, 0], sizes = [16, 8], strides = [1, 1]} : vector<64x8xf32> to vector<16x8xf32>
    %72 = tpu.concatenate %68, %69, %70, %71 in 1 : vector<16x8xf32>, vector<16x8xf32>, vector<16x8xf32>, vector<16x8xf32> -> vector<16x32xf32>
    %73 = arith.truncf %72 : vector<16x32xf32> to vector<16x32xbf16>
    %c0_22 = arith.constant 0 : index
    %c0_23 = arith.constant 0 : index
    %74 = vector.load %arg6[%c0_22, %c0_23] : memref<32x32xbf16, #tpu.memory_space<vmem>>, vector<32x32xbf16>
    %cst_24 = arith.constant dense<0.000000e+00> : vector<16x32xf32>
    %75 = tpu.matmul %73, %74, %cst_24 {dimension_numbers = #tpu.dot_dimension_numbers<[1], [0], [0], [1], [0, 0, 1, 1], [], []>} : vector<16x32xbf16>, vector<32x32xbf16>, vector<16x32xf32> -> vector<16x32xf32>
    %76 = arith.addf %0, %75 : vector<16x32xf32>
    %c0_25 = arith.constant 0 : index
    %c0_26 = arith.constant 0 : index
    %77 = vector.load %arg7[%c0_25, %c0_26] : memref<1x32xf32, #tpu.memory_space<vmem>>, vector<1x32xf32>
    %78 = vector.broadcast %77 : vector<1x32xf32> to vector<16x32xf32>
    %79 = arith.addf %76, %78 : vector<16x32xf32>
    %c0_27 = arith.constant 0 : index
    %c0_28 = arith.constant 0 : index
    %80 = vector.load %arg8[%c0_27, %c0_28] : memref<1x32xf32, #tpu.memory_space<vmem>>, vector<1x32xf32>
    %c0_29 = arith.constant 0 : index
    %c0_30 = arith.constant 0 : index
    %81 = vector.load %arg9[%c0_29, %c0_30] : memref<1x32xf32, #tpu.memory_space<vmem>>, vector<1x32xf32>
    %cst_31 = arith.constant dense<0.000000e+00> : vector<16xf32>
    %82 = vector.multi_reduction <add>, %79, %cst_31 [1] : vector<16x32xf32> to vector<16xf32>
    %83 = vector.shape_cast %82 : vector<16xf32> to vector<16x1xf32>
    %cst_32 = arith.constant 3.200000e+01 : f32
    %84 = vector.broadcast %cst_32 : f32 to vector<16x1xf32>
    %85 = arith.divf %83, %84 : vector<16x1xf32>
    %86 = arith.mulf %79, %79 : vector<16x32xf32>
    %cst_33 = arith.constant dense<0.000000e+00> : vector<16xf32>
    %87 = vector.multi_reduction <add>, %86, %cst_33 [1] : vector<16x32xf32> to vector<16xf32>
    %88 = vector.shape_cast %87 : vector<16xf32> to vector<16x1xf32>
    %cst_34 = arith.constant 3.200000e+01 : f32
    %89 = vector.broadcast %cst_34 : f32 to vector<16x1xf32>
    %90 = arith.divf %88, %89 : vector<16x1xf32>
    %91 = arith.mulf %85, %85 : vector<16x1xf32>
    %92 = arith.subf %90, %91 : vector<16x1xf32>
    %cst_35 = arith.constant 0.000000e+00 : f32
    %93 = vector.broadcast %cst_35 : f32 to vector<16x1xf32>
    %94 = arith.maximumf %92, %93 : vector<16x1xf32>
    %95 = vector.broadcast %85 : vector<16x1xf32> to vector<16x32xf32>
    %96 = arith.subf %79, %95 : vector<16x32xf32>
    %cst_36 = arith.constant 9.99999974E-6 : f32
    %97 = vector.broadcast %cst_36 : f32 to vector<16x1xf32>
    %98 = arith.addf %94, %97 : vector<16x1xf32>
    %99 = math.rsqrt %98 : vector<16x1xf32>
    %100 = vector.broadcast %99 : vector<16x1xf32> to vector<16x32xf32>
    %101 = arith.mulf %96, %100 : vector<16x32xf32>
    %102 = vector.broadcast %80 : vector<1x32xf32> to vector<16x32xf32>
    %103 = arith.mulf %101, %102 : vector<16x32xf32>
    %104 = vector.broadcast %81 : vector<1x32xf32> to vector<16x32xf32>
    %105 = arith.addf %103, %104 : vector<16x32xf32>
    %106 = arith.truncf %105 : vector<16x32xf32> to vector<16x32xbf16>
    %c0_37 = arith.constant 0 : index
    %c0_38 = arith.constant 0 : index
    %107 = vector.load %arg10[%c0_37, %c0_38] : memref<32x64xbf16, #tpu.memory_space<vmem>>, vector<32x64xbf16>
    %cst_39 = arith.constant dense<0.000000e+00> : vector<16x64xf32>
    %108 = tpu.matmul %106, %107, %cst_39 {dimension_numbers = #tpu.dot_dimension_numbers<[1], [0], [0], [1], [0, 0, 1, 1], [], []>} : vector<16x32xbf16>, vector<32x64xbf16>, vector<16x64xf32> -> vector<16x64xf32>
    %c0_40 = arith.constant 0 : index
    %c0_41 = arith.constant 0 : index
    %109 = vector.load %arg11[%c0_40, %c0_41] : memref<1x64xf32, #tpu.memory_space<vmem>>, vector<1x64xf32>
    %110 = vector.broadcast %109 : vector<1x64xf32> to vector<16x64xf32>
    %111 = arith.addf %108, %110 : vector<16x64xf32>
    %cst_42 = arith.constant 0.000000e+00 : f32
    %112 = vector.broadcast %cst_42 : f32 to vector<16x64xf32>
    %113 = arith.maximumf %111, %112 : vector<16x64xf32>
    %114 = arith.truncf %113 : vector<16x64xf32> to vector<16x64xbf16>
    %c0_43 = arith.constant 0 : index
    %c0_44 = arith.constant 0 : index
    %115 = vector.load %arg12[%c0_43, %c0_44] : memref<64x32xbf16, #tpu.memory_space<vmem>>, vector<64x32xbf16>
    %cst_45 = arith.constant dense<0.000000e+00> : vector<16x32xf32>
    %116 = tpu.matmul %114, %115, %cst_45 {dimension_numbers = #tpu.dot_dimension_numbers<[1], [0], [0], [1], [0, 0, 1, 1], [], []>} : vector<16x64xbf16>, vector<64x32xbf16>, vector<16x32xf32> -> vector<16x32xf32>
    %117 = arith.addf %79, %116 : vector<16x32xf32>
    %c0_46 = arith.constant 0 : index
    %c0_47 = arith.constant 0 : index
    %118 = vector.load %arg13[%c0_46, %c0_47] : memref<1x32xf32, #tpu.memory_space<vmem>>, vector<1x32xf32>
    %119 = vector.broadcast %118 : vector<1x32xf32> to vector<16x32xf32>
    %120 = arith.addf %117, %119 : vector<16x32xf32>
    %c0_48 = arith.constant 0 : index
    %c0_49 = arith.constant 0 : index
    %121 = vector.load %arg14[%c0_48, %c0_49] : memref<16x32xf32, #tpu.memory_space<vmem>>, vector<16x32xf32>
    tpu.vector_store %arg14[%c0_48, %c0_49], %120 {strides = array<i32>} : memref<16x32xf32, #tpu.memory_space<vmem>>, vector<16x32xf32>,
    return
  }
}

</mosaic_0001>

<bundles_post_ra>
// kernel: transformer_layer.1
= control target key start
LH: loop header
LB: loop body
LE: loop exit
PB: predicated region body
PF: predicated region fallthrough
CT: control target
= control target key end

     0   :  { %vm53_vm0 = vcmask 261120   ;;  %s1144_s0 = inlined_call_operand.vmem [shape: f32[16,32], index: 0, kind: input, shape index: {}]   ;;  %s1145_s1 = inlined_call_operand.vmem [shape: f32[64,64], index: 1, kind: input, shape index: {}]   ;;  %s1146_s2 = inlined_call_operand.vmem [shape: f32[1,32], index: 2, kind: input, shape index: {}]   ;;  %s1147_s3 = inlined_call_operand.vmem [shape: f32[1,32], index: 3, kind: input, shape index: {}]   ;;  %s1148_s4 = inlined_call_operand.vmem [shape: bf16[32,96], index: 4, kind: input, shape index: {}]   ;;  %s1149_s5 = inlined_call_operand.vmem [shape: f32[1,96], index: 5, kind: input, shape index: {}]   ;;  %s1150_s6 = inlined_call_operand.vmem [shape: bf16[32,32], index: 6, kind: input, shape index: {}]   ;;  %s1151_s7 = inlined_call_operand.vmem [shape: f32[1,32], index: 7, kind: input, shape index: {}]   ;;  %s1152_s8 = inlined_call_operand.vmem [shape: f32[1,32], index: 8, kind: input, shape index: {}]   ;;  %s1153_s9 = inlined_call_operand.vmem [shape: f32[1,32], index: 9, kind: input, shape index: {}]   ;;  %s1154_s10 = inlined_call_operand.vmem [shape: bf16[32,64], index: 10, kind: input, shape index: {}]   ;;  %s1155_s11 = inlined_call_operand.vmem [shape: f32[1,64], index: 11, kind: input, shape index: {}]   ;;  %s1156_s12 = inlined_call_operand.vmem [shape: bf16[64,32], index: 12, kind: input, shape index: {}]   ;;  %s1157_s13 = inlined_call_operand.vmem [shape: f32[1,32], index: 13, kind: input, shape index: {}]   ;;  %s1158_s14 = inlined_call_operand.hbm [shape: f32[16,32], index: 14, kind: output, shape index: {}]  }
   0x1   :  { %v945_v0 = vld [vmem:[%s1144_s0] sm:$0xff]  ;;  %v954_v3 = vld [vmem:[%s1144_s0 + $0x8] sm:$0xff] }
   0x2   :  { %v54_v1 = vsel %vm53_vm0, %v945_v0, 0.0  ;;  %v69_v2 = vmul.f32 %v945_v0, %v945_v0 }
   0x3   :  { %55 = vadd.xlane.f32.xlu0 %v54_v1 }
   0x4   :  { %v71_v4 = vsel %vm53_vm0, %v69_v2, 0.0 }
   0x5   :  { %72 = vadd.xlane.f32.xlu1 %v71_v4 }
   0x6   :  { %19 = vsyncpa [#allocation3], 0  ;;  %v70_v5 = vmul.f32 %v954_v3, %v954_v3  ;;  %v57_v6 = vsel %vm53_vm0, %v954_v3, 0.0  ;;  %v856_v8 = vmov 32.0   ;;  %v726_v20 = vld [vmem:[%s1148_s4 + $0x8] sm:$0xff]  ;;  %v725_v22 = vld [vmem:[%s1148_s4] sm:$0xff] }
   0x7   :  { %788 = vrcp.f32 %v856_v8  ;;  %151 = vmatpush.bf16.msra.mxu0 %v726_v20  ;;  %v780_v47 = vld [vmem:[%s1146_s2] ss:$0 sm:$0xff]  ;;  %s857_s24 = smov 120   ;;  %s859_s25 = smov 112   ;;  %vm195_vm8 = vcmask 64512   ;;  %vm273_vm9 = vcmask 523264  }
   0x8   :  { %v74_v7 = vsel %vm53_vm0, %v70_v5, 0.0  ;;  %v781_v53 = vld [vmem:[%s1147_s3] ss:$0 sm:$0xff]  ;;  %s858_s3 = smov 104   ;;  %s860_s26 = smov 96   ;;  %vm445_vm10 = vcmask 130048  }
   0x9   :  { %v782_v59 = vld [vmem:[%s1149_s5] ss:$0 sm:$0xff]  ;;  %s861_s5 = smov 64   ;;  %vm448_vm11 = vcmask 195584  }
   0xb   :  { %58 = vadd.xlane.f32.xlu0 %v57_v6  ;;  %152 = vmatpush.bf16.msra.mxu0 %v725_v22 }
   0xd   :  { %75 = vadd.xlane.f32.xlu1 %v74_v7  ;;  %v789_v9 = vpop.eup %788 }
   0xe   :  { %v61_v10 = vmul.f32 32.0, %v789_v9  ;;  %vm65_vm1 = vweird.f32 %v789_v9 }
  0x10   :  { %v62_v11 = vsub.f32 1.0, %v61_v10 }
  0x12   :  { %v63_v12 = vmul.f32 %v789_v9, %v62_v11 }
  0x14   :  { %v64_v13 = vadd.f32 %v789_v9, %v63_v12 }
  0x16   :  { %v962_v14 = vsel %vm65_vm1, %v789_v9, %v64_v13 }
  0x76   :  { %v56_v15 = vpop.xlane.xlu0 %55 }
  0x77   :  { %v67_v16 = vmul.f32 %v962_v14, %v56_v15 }
  0x78   :  { %v73_v17 = vpop.xlane.xlu1 %72 }
  0x79   :  { %v79_v18 = vmul.f32 %v67_v16, %v67_v16  ;;  %v77_v19 = vmul.f32 %v73_v17, %v962_v14  ;;  %v85_v44 = vsub.f32 %v945_v0, %v67_v16 }
  0x7b   :  { %v81_v21 = vsub.f32 %v77_v19, %v79_v18 }
  0x7d   :  { %v83_v23 = vmax.f32 %v81_v21, 0.0 }
  0x7e   :  { %v59_v24 = vpop.xlane.xlu0 %58 }
  0x7f   :  { %v87_v25 = vadd.f32 1e-05, %v83_v23  ;;  %v68_v26 = vmul.f32 %v962_v14, %v59_v24 }
  0x80   :  { %v76_v27 = vpop.xlane.xlu1 %75 }
  0x81   :  { %790 = vrsqrt.f32 %v87_v25  ;;  %v80_v28 = vmul.f32 %v68_v26, %v68_v26  ;;  %v78_v29 = vmul.f32 %v76_v27, %v962_v14  ;;  %vm95_vm3 = vweird.f32 %v87_v25  ;;  %v259_v27 = vld [vmem:[%s1145_s1 + $0x10] sm:$0xff] }
  0x82   :  { %v86_v49 = vsub.f32 %v954_v3, %v68_v26 }
  0x83   :  { %v82_v30 = vsub.f32 %v78_v29, %v80_v28  ;;  %v257_v28 = vld [vmem:[%s1145_s1] sm:$0xff] }
  0x85   :  { %v84_v31 = vmax.f32 %v82_v30, 0.0 }
  0x87   :  { %v791_v32 = vpop.eup %790  ;;  %v88_v34 = vadd.f32 1e-05, %v84_v31 }
  0x88   :  { %v90_v33 = vmul.f32 %v791_v32, %v87_v25  ;;  %vm96_vm2 = vweird.f32 %v791_v32 }
  0x89   :  { %792 = vrsqrt.f32 %v88_v34  ;;  %vm97_vm4 = vmor %vm95_vm3, %vm96_vm2  ;;  %vm105_vm6 = vweird.f32 %v88_v34 }
  0x8a   :  { %v91_v35 = vmul.f32 %v791_v32, %v90_v33 }
  0x8c   :  { %v92_v36 = vmul.f32 0.5, %v91_v35 }
  0x8e   :  { %v93_v37 = vsub.f32 1.5, %v92_v36 }
  0x8f   :  { %v793_v38 = vpop.eup %792 }
  0x90   :  { %v94_v39 = vmul.f32 %v791_v32, %v93_v37  ;;  %v100_v40 = vmul.f32 %v793_v38, %v88_v34  ;;  %vm106_vm5 = vweird.f32 %v793_v38  ;;  %v260_v37 = vld [vmem:[%s1145_s1 + $0x18] sm:$0xff] }
  0x91   :  { %vm107_vm7 = vmor %vm105_vm6, %vm106_vm5 }
  0x92   :  { %v101_v41 = vmul.f32 %v793_v38, %v100_v40  ;;  %v98_v43 = vsel %vm97_vm4, %v791_v32, %v94_v39 }
  0x93   :  { %v109_v46 = vmul.f32 %v98_v43, %v85_v44 }
  0x94   :  { %v102_v42 = vmul.f32 0.5, %v101_v41 }
  0x95   :  { %v114_v52 = vmul.f32 %v780_v47, %v109_v46  ;;  %v261_v46 = vld [vmem:[%s1145_s1 + $0x20] sm:$0xff] }
  0x96   :  { %v103_v45 = vsub.f32 1.5, %v102_v42 }
  0x97   :  { %v119_v55 = vadd.f32 %v781_v53, %v114_v52 }
  0x98   :  { %v104_v48 = vmul.f32 %v793_v38, %v103_v45 }
  0x9a   :  { %v108_v50 = vsel %vm107_vm7, %v793_v38, %v104_v48  ;;  %v258_v38 = vld [vmem:[%s1145_s1 + $0x8] sm:$0xff] }
  0x9b   :  { %v110_v51 = vmul.f32 %v108_v50, %v86_v49 }
  0x9d   :  { %v115_v54 = vmul.f32 %v780_v47, %v110_v51  ;;  %v262_v51 = vld [vmem:[%s1145_s1 + $0x28] sm:$0xff] }
  0x9f   :  { %v120_v56 = vadd.f32 %v781_v53, %v115_v54 }
  0xa1   :  { %v121_v57 = vpack.c.bf16 %v120_v56, %v119_v55  ;;  %v263_v56 = vld [vmem:[%s1145_s1 + $0x30] sm:$0xff] }
  0xa3   :  { %681 = vmatmul.msk.bf16.vlgmr.msra.gmra.mxu0 %vm53_vm0, %v121_v57 }
 0x120   :  { %v154_v58 = vpop.f32.mrf.mxu0 }
 0x121   :  { %v155_v61 = vadd.f32 %v782_v59, %v154_v58 }
 0x128   :  { %v156_v60 = vpop.f32.mrf.mxu0 }
 0x129   :  { %v157_v62 = vadd.f32 %v782_v59, %v156_v60 }
 0x12b   :  { %v760_v63 = vpack.i.bf16 %v157_v62, %v155_v61  ;;  %v986_v1 = vpack.c.bf16 %v157_v62, %v155_v61  ;;  %v264_v61 = vld [vmem:[%s1145_s1 + $0x38] sm:$0xff]  ;;  %s862_s1 = smov 8  }
 0x12d   :  { %761 = vrot.lane.b32.xlu0 %v760_v63, %s857_s24  ;;  %751 = vrot.lane.b32.xlu2 %v760_v63, %s858_s3  ;;  %s863_s24 = smov 16   ;;  %s864_s3 = smov 24  }
 0x135   :  { %756 = vrot.lane.b32.xlu2 %v760_v63, %s859_s25 }
 0x187   :  { %v752_v2 = vpop.permute.xlu2 %751 }
 0x188   :  { %v754_v4 = vunpack.i.h.bf16 %v752_v2  ;;  %v753_v5 = vunpack.i.l.bf16 %v752_v2 }
 0x18a   :  { %v182_v6 = vpack.c.bf16 %v754_v4, %v753_v5 }
 0x18c   :  { %193 = vrot.lane.b32.xlu1 %v182_v6, %s860_s26 }
 0x18f   :  { %v757_v7 = vpop.permute.xlu2 %756 }
 0x190   :  { %v759_v8 = vunpack.i.h.bf16 %v757_v7  ;;  %v758_v9 = vunpack.i.l.bf16 %v757_v7 }
 0x192   :  { %v988_v10 = vpack.c.bf16 %v759_v8, %v758_v9 }
 0x194   :  { %191 = vrot.lane.b32.xlu2 %v988_v10, %s860_s26  ;;  %372 = vrot.lane.b32.xlu1 %v182_v6, %s861_s5 }
 0x19f   :  { %v762_v11 = vpop.permute.xlu0 %761 }
 0x1a0   :  { %v764_v12 = vunpack.i.h.bf16 %v762_v11  ;;  %v763_v13 = vunpack.i.l.bf16 %v762_v11 }
 0x1a2   :  { %v992_v15 = vpack.c.bf16 %v764_v12, %v763_v13 }
 0x1a4   :  { %189 = vrot.lane.b32.xlu2 %v992_v15, %s860_s26 }
 0x1ac   :  { %187 = vrot.lane.b32.xlu2 %v986_v1, %s860_s26 }
 0x1ee   :  { %v192_v18 = vpop.permute.xlu2 %191 }
 0x1ef   :  { %v215_v20 = vsel %vm195_vm8, %v192_v18, 0 }
 0x1fe   :  { %v194_v16 = vpop.permute.xlu1 %193  ;;  %v190_v21 = vpop.permute.xlu2 %189 }
 0x1ff   :  { %v218_v17 = vsel %vm195_vm8, %v194_v16, 0  ;;  %v212_v22 = vsel %vm195_vm8, %v190_v21, 0 }
 0x200   :  { %224 = vmatpush.bf16.xpose.msrb.mxu0 %v218_v17  ;;  %735 = vmatpush.bf16.xpose.msra.mxu1 %v218_v17 }
 0x206   :  { %v373_v19 = vpop.permute.xlu1 %372  ;;  %v188_v23 = vpop.permute.xlu2 %187 }
 0x207   :  { %394 = vmatpush.bf16.msra.mxu2 %v373_v19  ;;  %v209_v24 = vsel %vm195_vm8, %v188_v23, 0 }
 0x208   :  { %225 = vmatpush.bf16.xpose.msrb.mxu0 %v215_v20  ;;  %736 = vmatpush.bf16.xpose.msra.mxu1 %v215_v20 }
 0x210   :  { %226 = vmatpush.bf16.xpose.msrb.mxu0 %v212_v22  ;;  %737 = vmatpush.bf16.xpose.msra.mxu1 %v212_v22 }
 0x218   :  { %227 = vmatpush.bf16.xpose.msrb.mxu0 %v209_v24  ;;  %738 = vmatpush.bf16.xpose.msra.mxu1 %v209_v24 }
 0x21f   :  { %682 = vmatmul.msk.bf16.vlgmr.msrb.gmra.mxu0 %vm195_vm8, %v986_v1  ;;  %683 = vmatmul.msk.bf16.vlgmr.msra.gmra.mxu1 %vm195_vm8, %v992_v15 }
 0x22f   :  { %684 = vmatmul.msk.bf16.gmra.mxu1 %vm195_vm8, %v988_v10 }
 0x23f   :  { %685 = vmatmul.msk.bf16.gmra.mxu1 %vm195_vm8, %v182_v6 }
 0x29c   :  { %v229_v25 = vpop.f32.mrf.mxu0  ;;  %v234_v26 = vpop.f32.mrf.mxu1 }
 0x29d   :  { %v249_v29 = vmul.f32 0.35355338, %v229_v25  ;;  %v251_v30 = vmul.f32 0.35355338, %v234_v26 }
 0x29f   :  { %v1013_v31 = vadd.f32 %v259_v27, %v251_v30  ;;  %v265_v32 = vadd.f32 %v257_v28, %v249_v29 }
 0x2a1   :  { %v280_v33 = vsel %vm273_vm9, %v1013_v31, -inf  ;;  %v274_v34 = vsel %vm273_vm9, %v265_v32, -inf }
 0x2a2   :  { %281 = vmax.xlane.f32.xlu1 %v280_v33  ;;  %275 = vmax.xlane.f32.xlu0 %v274_v34 }
 0x2a4   :  { %v231_v35 = vpop.f32.mrf.mxu0  ;;  %v236_v36 = vpop.f32.mrf.mxu1 }
 0x2a5   :  { %v250_v39 = vmul.f32 0.35355338, %v231_v35  ;;  %v252_v40 = vmul.f32 0.35355338, %v236_v36 }
 0x2a7   :  { %v268_v41 = vadd.f32 %v260_v37, %v252_v40  ;;  %v266_v42 = vadd.f32 %v258_v38, %v250_v39 }
 0x2a9   :  { %v283_v43 = vsel %vm273_vm9, %v268_v41, -inf  ;;  %v277_v44 = vsel %vm273_vm9, %v266_v42, -inf }
 0x2aa   :  { %284 = vmax.xlane.f32.xlu0 %v283_v43  ;;  %278 = vmax.xlane.f32.xlu2 %v277_v44 }
 0x2ac   :  { %v239_v45 = vpop.f32.mrf.mxu1 }
 0x2ad   :  { %v253_v47 = vmul.f32 0.35355338, %v239_v45 }
 0x2af   :  { %v269_v48 = vadd.f32 %v261_v46, %v253_v47 }
 0x2b1   :  { %v286_v49 = vsel %vm273_vm9, %v269_v48, -inf }
 0x2b2   :  { %287 = vmax.xlane.f32.xlu2 %v286_v49 }
 0x2b4   :  { %v241_v50 = vpop.f32.mrf.mxu1 }
 0x2b5   :  { %v254_v52 = vmul.f32 0.35355338, %v241_v50 }
 0x2b7   :  { %v270_v53 = vadd.f32 %v262_v51, %v254_v52 }
 0x2b9   :  { %v289_v54 = vsel %vm273_vm9, %v270_v53, -inf }
 0x2ba   :  { %290 = vmax.xlane.f32.xlu1 %v289_v54 }
 0x2bc   :  { %v244_v55 = vpop.f32.mrf.mxu1 }
 0x2bd   :  { %v255_v57 = vmul.f32 0.35355338, %v244_v55 }
 0x2bf   :  { %v271_v58 = vadd.f32 %v263_v56, %v255_v57 }
 0x2c1   :  { %v292_v59 = vsel %vm273_vm9, %v271_v58, -inf }
 0x2c2   :  { %293 = vmax.xlane.f32.xlu0 %v292_v59 }
 0x2c4   :  { %v246_v60 = vpop.f32.mrf.mxu1 }
 0x2c5   :  { %v256_v62 = vmul.f32 0.35355338, %v246_v60 }
 0x2c7   :  { %v272_v63 = vadd.f32 %v264_v61, %v256_v62 }
 0x2c9   :  { %v295_v2 = vsel %vm273_vm9, %v272_v63, -inf }
 0x2ca   :  { %296 = vmax.xlane.f32.xlu2 %v295_v2 }
 0x2d3   :  { %366 = vrot.lane.b32.xlu1 %v986_v1, %s861_s5 }
 0x315   :  { %v276_v4 = vpop.xlane.xlu0 %275  ;;  %v282_v26 = vpop.xlane.xlu1 %281 }
 0x316   :  { %v298_v5 = vsub.f32 %v265_v32, %v276_v4  ;;  %v300_v27 = vsub.f32 %v1013_v31, %v282_v26 }
 0x318   :  { %v306_v6 = vmul.f32 1.442695, %v298_v5  ;;  %v310_v28 = vmul.f32 1.442695, %v300_v27 }
 0x31a   :  { %794 = vpow2.f32 %v306_v6 }
 0x31d   :  { %v285_v7 = vpop.xlane.xlu0 %284  ;;  %v279_v8 = vpop.xlane.xlu2 %278 }
 0x31e   :  { %v301_v9 = vsub.f32 %v268_v41, %v285_v7  ;;  %v299_v11 = vsub.f32 %v266_v42, %v279_v8 }
 0x320   :  { %v312_v12 = vmul.f32 1.442695, %v301_v9  ;;  %v308_v13 = vmul.f32 1.442695, %v299_v11  ;;  %v795_v16 = vpop.eup %794 }
 0x321   :  { %v322_v17 = vsel %vm273_vm9, %v795_v16, 0.0 }
 0x322   :  { %796 = vpow2.f32 %v312_v12  ;;  %323 = vadd.xlane.f32.xlu0 %v322_v17 }
 0x323   :  { %798 = vpow2.f32 %v308_v13 }
 0x325   :  { %v288_v30 = vpop.xlane.xlu2 %287 }
 0x328   :  { %v1045_v18 = vpop.eup %796 }
 0x329   :  { %v799_v19 = vpop.eup %798  ;;  %v331_v1 = vsel %vm273_vm9, %v1045_v18, 0.0 }
 0x32a   :  { %332 = vadd.xlane.f32.xlu1 %v331_v1  ;;  %v325_v20 = vsel %vm273_vm9, %v799_v19, 0.0 }
 0x32b   :  { %326 = vadd.xlane.f32.xlu2 %v325_v20 }
 0x32d   :  { %v291_v29 = vpop.xlane.xlu1 %290 }
 0x32e   :  { %v303_v32 = vsub.f32 %v270_v53, %v291_v29 }
 0x330   :  { %v316_v33 = vmul.f32 1.442695, %v303_v32 }
 0x335   :  { %v294_v21 = vpop.xlane.xlu0 %293 }
 0x336   :  { %v304_v22 = vsub.f32 %v271_v58, %v294_v21  ;;  %370 = vrot.lane.b32.xlu0 %v988_v10, %s861_s5  ;;  %v302_v10 = vsub.f32 %v269_v48, %v288_v30 }
 0x338   :  { %v318_v23 = vmul.f32 1.442695, %v304_v22  ;;  %v314_v35 = vmul.f32 1.442695, %v302_v10 }
 0x33a   :  { %800 = vpow2.f32 %v318_v23 }
 0x33b   :  { %802 = vpow2.f32 %v310_v28  ;;  %v727_v28 = vld [vmem:[%s1150_s6] sm:$0xff] }
 0x33c   :  { %804 = vpow2.f32 %v316_v33 }
 0x33d   :  { %v297_v36 = vpop.xlane.xlu2 %296  ;;  %806 = vpow2.f32 %v314_v35 }
 0x33e   :  { %v305_v38 = vsub.f32 %v272_v63, %v297_v36 }
 0x340   :  { %v1052_v24 = vpop.eup %800  ;;  %v320_v39 = vmul.f32 1.442695, %v305_v38 }
 0x341   :  { %v340_v25 = vsel %vm273_vm9, %v1052_v24, 0.0  ;;  %v803_v34 = vpop.eup %802 }
 0x342   :  { %341 = vadd.xlane.f32.xlu1 %v340_v25  ;;  %v328_v37 = vsel %vm273_vm9, %v803_v34, 0.0  ;;  %808 = vpow2.f32 %v320_v39 }
 0x343   :  { %368 = vrot.lane.b32.xlu2 %v992_v15, %s861_s5  ;;  %v805_v15 = vpop.eup %804  ;;  %s661_s5 = sshll.u32 %s1158_s14, 4  ;;  %s662_s5 = int_to_ptr.hbm [resolvable:$true] %s661_s5 }
 0x344   :  { %v807_v40 = vpop.eup %806  ;;  %v337_v31 = vsel %vm273_vm9, %v805_v15, 0.0 }
 0x345   :  { %v334_v41 = vsel %vm273_vm9, %v807_v40, 0.0  ;;  %v367_v51 = vpop.permute.xlu1 %366 }
 0x348   :  { %v809_v42 = vpop.eup %808 }
 0x349   :  { %v343_v43 = vsel %vm273_vm9, %v809_v42, 0.0 }
 0x360   :  { %329 = vadd.xlane.f32.xlu0 %v328_v37 }
 0x368   :  { %338 = vadd.xlane.f32.xlu0 %v337_v31 }
 0x36c   :  { %335 = vadd.xlane.f32.xlu2 %v334_v41 }
 0x374   :  { %344 = vadd.xlane.f32.xlu2 %v343_v43  ;;  %v783_v43 = vld [vmem:[%s1151_s7] ss:$0 sm:$0xff] }
 0x395   :  { %v324_v44 = vpop.xlane.xlu0 %323 }
 0x39d   :  { %v333_v54 = vpop.xlane.xlu1 %332 }
 0x39e   :  { %v327_v45 = vpop.xlane.xlu2 %326 }
 0x39f   :  { %810 = vrcp.f32 %v327_v45 }
 0x3a0   :  { %812 = vrcp.f32 %v324_v44 }
 0x3a1   :  { %814 = vrcp.f32 %v333_v54 }
 0x3a5   :  { %v811_v47 = vpop.eup %810 }
 0x3a6   :  { %v369_v48 = vpop.permute.xlu2 %368  ;;  %v813_v49 = vpop.eup %812  ;;  %v355_v50 = vmul.f32 %v811_v47, %v799_v19 }
 0x3a7   :  { %v354_v52 = vmul.f32 %v813_v49, %v795_v16  ;;  %v815_v56 = vpop.eup %814 }
 0x3a8   :  { %v371_v46 = vpop.permute.xlu0 %370  ;;  %v357_v59 = vmul.f32 %v815_v56, %v1045_v18 }
 0x3a9   :  { %395 = vmatpush.bf16.msra.mxu2 %v371_v46  ;;  %v362_v53 = vpack.c.bf16 %v355_v50, %v354_v52 }
 0x3ad   :  { %396 = vmatpush.bf16.msra.mxu2 %v369_v48 }
 0x3b1   :  { %397 = vmatpush.bf16.msra.mxu2 %v367_v51 }
 0x3b4   :  { %686 = vmatmul.msk.bf16.vlgmr.msra.gmra.mxu2 %vm273_vm9, %v362_v53 }
 0x3b5   :  { %v342_v8 = vpop.xlane.xlu1 %341 }
 0x3d3   :  { %v330_v55 = vpop.xlane.xlu0 %329 }
 0x3d4   :  { %816 = vrcp.f32 %v330_v55 }
 0x3da   :  { %v817_v57 = vpop.eup %816 }
 0x3db   :  { %v356_v58 = vmul.f32 %v817_v57, %v803_v34  ;;  %v339_v62 = vpop.xlane.xlu0 %338 }
 0x3dd   :  { %v363_v60 = vpack.c.bf16 %v357_v59, %v356_v58 }
 0x3df   :  { %v336_v61 = vpop.xlane.xlu2 %335  ;;  %687 = vmatmul.msk.bf16.gmra.mxu2 %vm273_vm9, %v363_v60  ;;  %v730_v60 = vld [vmem:[%s1154_s10 + $0x8] sm:$0xff] }
 0x3e0   :  { %818 = vrcp.f32 %v336_v61  ;;  %585 = vmatpush.bf16.msra.mxu0 %v730_v60 }
 0x3e1   :  { %820 = vrcp.f32 %v339_v62 }
 0x3e6   :  { %v819_v63 = vpop.eup %818 }
 0x3e7   :  { %v821_v2 = vpop.eup %820  ;;  %v358_v4 = vmul.f32 %v819_v63, %v807_v40  ;;  %v345_v6 = vpop.xlane.xlu2 %344  ;;  %v729_v63 = vld [vmem:[%s1154_s10] sm:$0xff] }
 0x3e8   :  { %v359_v5 = vmul.f32 %v821_v2, %v805_v15  ;;  %822 = vrcp.f32 %v345_v6  ;;  %586 = vmatpush.bf16.msra.mxu0 %v729_v63 }
 0x3e9   :  { %824 = vrcp.f32 %v342_v8 }
 0x3ea   :  { %v364_v7 = vpack.c.bf16 %v359_v5, %v358_v4 }
 0x3ee   :  { %v823_v9 = vpop.eup %822 }
 0x3ef   :  { %688 = vmatmul.msk.bf16.gmra.mxu2 %vm273_vm9, %v364_v7  ;;  %v825_v11 = vpop.eup %824  ;;  %v361_v12 = vmul.f32 %v823_v9, %v809_v42  ;;  %v734_v9 = vld [vmem:[%s1156_s12 + $0x18] sm:$0xff] }
 0x3f0   :  { %v360_v13 = vmul.f32 %v825_v11, %v1052_v24  ;;  %v728_v24 = vld [vmem:[%s1150_s6 + $0x8] sm:$0xff] }
 0x3f1   :  { %477 = vmatpush.bf16.msra.mxu3 %v728_v24 }
 0x3f2   :  { %v365_v16 = vpack.c.bf16 %v361_v12, %v360_v13 }
 0x3f5   :  { %478 = vmatpush.bf16.msra.mxu3 %v727_v28 }
 0x3f9   :  { %635 = vmatpush.bf16.msrb.mxu3 %v734_v9 }
 0x3ff   :  { %689 = vmatmul.msk.bf16.gmra.mxu2 %vm273_vm9, %v365_v16 }
 0x437   :  { %v399_v17 = vpop.f32.mrf.mxu2 }
 0x43f   :  { %v401_v18 = vpop.f32.mrf.mxu2 }
 0x462   :  { %v404_v19 = vpop.f32.mrf.mxu2 }
 0x46a   :  { %v406_v1 = vpop.f32.mrf.mxu2 }
 0x46b   :  { %v765_v20 = vpack.i.bf16 %v406_v1, %v404_v19 }
 0x46d   :  { %766 = vrot.lane.b32.xlu0 %v765_v20, %s862_s1 }
 0x472   :  { %v409_v21 = vpop.f32.mrf.mxu2 }
 0x47a   :  { %v411_v22 = vpop.f32.mrf.mxu2 }
 0x47b   :  { %v770_v23 = vpack.i.bf16 %v411_v22, %v409_v21 }
 0x47d   :  { %771 = vrot.lane.b32.xlu1 %v770_v23, %s863_s24 }
 0x482   :  { %v414_v25 = vpop.f32.mrf.mxu2 }
 0x48a   :  { %v416_v26 = vpop.f32.mrf.mxu2 }
 0x48b   :  { %v775_v27 = vpack.i.bf16 %v416_v26, %v414_v25 }
 0x48d   :  { %776 = vrot.lane.b32.xlu2 %v775_v27, %s864_s3  ;;  %v784_v27 = vld [vmem:[%s1152_s8] ss:$0 sm:$0xff] }
 0x4df   :  { %v767_v29 = vpop.permute.xlu0 %766 }
 0x4e0   :  { %v769_v30 = vunpack.i.h.bf16 %v767_v29  ;;  %v768_v32 = vunpack.i.l.bf16 %v767_v29 }
 0x4e2   :  { %v444_v36 = vsel %vm195_vm8, %v401_v18, %v769_v30  ;;  %v443_v37 = vsel %vm195_vm8, %v399_v17, %v768_v32 }
 0x4e7   :  { %v777_v10 = vpop.permute.xlu2 %776 }
 0x4e8   :  { %v779_v38 = vunpack.i.h.bf16 %v777_v10  ;;  %v778_v15 = vunpack.i.l.bf16 %v777_v10 }
 0x4ef   :  { %v772_v33 = vpop.permute.xlu1 %771 }
 0x4f0   :  { %v774_v34 = vunpack.i.h.bf16 %v772_v33  ;;  %v773_v35 = vunpack.i.l.bf16 %v772_v33  ;;  %v785_v33 = vld [vmem:[%s1153_s9] ss:$0 sm:$0xff] }
 0x4f2   :  { %v447_v39 = vsel %vm445_vm10, %v444_v36, %v774_v34  ;;  %v446_v40 = vsel %vm445_vm10, %v443_v37, %v773_v35 }
 0x4f3   :  { %v449_v31 = vsel %vm448_vm11, %v446_v40, %v778_v15  ;;  %v450_v41 = vsel %vm448_vm11, %v447_v39, %v779_v38  ;;  %v733_v38 = vld [vmem:[%s1156_s12 + $0x10] sm:$0xff]  ;;  %v732_v15 = vld [vmem:[%s1156_s12 + $0x8] sm:$0xff]  ;;  %v731_v39 = vld [vmem:[%s1156_s12] sm:$0xff]  ;;  %s865_s12 = smov [#allocation2]  }
 0x4f4   :  { %v451_v42 = vpack.c.bf16 %v450_v41, %v449_v31  ;;  %636 = vmatpush.bf16.msrb.mxu3 %v733_v38  ;;  %v786_v31 = vld [vmem:[%s1155_s11] ss:$0 sm:$0xff]  ;;  %s659_s11 = sshll.u32 %s865_s12, 4  ;;  %s660_s11 = int_to_ptr.vmem [resolvable:$true] %s659_s11 }
 0x4f6   :  { %698 = vmatmul.msk.bf16.vlgmr.msra.gmra.mxu3 %vm53_vm0, %v451_v42 }
 0x4f8   :  { %637 = vmatpush.bf16.msrb.mxu3 %v732_v15 }
 0x4fc   :  { %638 = vmatpush.bf16.msrb.mxu3 %v731_v39 }
 0x579   :  { %v480_v44 = vpop.f32.mrf.mxu3 }
 0x57a   :  { %v485_v45 = vadd.f32 %v480_v44, %v945_v0 }
 0x57c   :  { %v1083_v46 = vadd.f32 %v783_v43, %v485_v45 }
 0x57e   :  { %v495_v47 = vsel %vm53_vm0, %v1083_v46, 0.0  ;;  %v503_v48 = vmul.f32 %v1083_v46, %v1083_v46 }
 0x57f   :  { %496 = vadd.xlane.f32.xlu0 %v495_v47 }
 0x580   :  { %v505_v49 = vsel %vm53_vm0, %v503_v48, 0.0  ;;  %v787_v48 = vld [vmem:[%s1157_s13] ss:$0 sm:$0xff]  ;;  %s866_s13 = smov 128  }
 0x581   :  { %506 = vadd.xlane.f32.xlu2 %v505_v49  ;;  %v482_v50 = vpop.f32.mrf.mxu3 }
 0x582   :  { %v486_v51 = vadd.f32 %v482_v50, %v954_v3 }
 0x584   :  { %v1091_v52 = vadd.f32 %v783_v43, %v486_v51 }
 0x586   :  { %v498_v0 = vsel %vm53_vm0, %v1091_v52, 0.0  ;;  %v504_v53 = vmul.f32 %v1091_v52, %v1091_v52 }
 0x587   :  { %499 = vadd.xlane.f32.xlu1 %v498_v0 }
 0x588   :  { %v508_v54 = vsel %vm53_vm0, %v504_v53, 0.0 }
 0x589   :  { %509 = vadd.xlane.f32.xlu0 %v508_v54 }
 0x5f2   :  { %v497_v55 = vpop.xlane.xlu0 %496 }
 0x5f3   :  { %v501_v56 = vmul.f32 %v497_v55, %v962_v14 }
 0x5f4   :  { %v507_v57 = vpop.xlane.xlu2 %506 }
 0x5f5   :  { %v513_v58 = vmul.f32 %v501_v56, %v501_v56  ;;  %v511_v59 = vmul.f32 %v507_v57, %v962_v14  ;;  %v519_v25 = vsub.f32 %v1083_v46, %v501_v56 }
 0x5f7   :  { %v515_v3 = vsub.f32 %v511_v59, %v513_v58 }
 0x5f9   :  { %v517_v61 = vmax.f32 %v515_v3, 0.0 }
 0x5fa   :  { %v500_v62 = vpop.xlane.xlu1 %499 }
 0x5fb   :  { %v521_v2 = vadd.f32 1e-05, %v517_v61  ;;  %v502_v4 = vmul.f32 %v500_v62, %v962_v14 }
 0x5fc   :  { %v510_v5 = vpop.xlane.xlu0 %509 }
 0x5fd   :  { %826 = vrsqrt.f32 %v521_v2  ;;  %v514_v6 = vmul.f32 %v502_v4, %v502_v4  ;;  %v512_v7 = vmul.f32 %v510_v5, %v962_v14  ;;  %vm529_vm13 = vweird.f32 %v521_v2 }
 0x5fe   :  { %v520_v29 = vsub.f32 %v1091_v52, %v502_v4 }
 0x5ff   :  { %v516_v8 = vsub.f32 %v512_v7, %v514_v6 }
 0x601   :  { %v518_v11 = vmax.f32 %v516_v8, 0.0 }
 0x603   :  { %v827_v12 = vpop.eup %826  ;;  %v522_v16 = vadd.f32 1e-05, %v518_v11 }
 0x604   :  { %v524_v13 = vmul.f32 %v827_v12, %v521_v2  ;;  %vm530_vm12 = vweird.f32 %v827_v12 }
 0x605   :  { %828 = vrsqrt.f32 %v522_v16  ;;  %vm531_vm14 = vmor %vm529_vm13, %vm530_vm12  ;;  %vm539_vm1 = vweird.f32 %v522_v16 }
 0x606   :  { %v525_v17 = vmul.f32 %v827_v12, %v524_v13 }
 0x608   :  { %v526_v18 = vmul.f32 0.5, %v525_v17 }
 0x60a   :  { %v527_v19 = vsub.f32 1.5, %v526_v18 }
 0x60b   :  { %v829_v1 = vpop.eup %828 }
 0x60c   :  { %v528_v20 = vmul.f32 %v827_v12, %v527_v19  ;;  %v534_v21 = vmul.f32 %v829_v1, %v522_v16  ;;  %vm540_vm15 = vweird.f32 %v829_v1 }
 0x60d   :  { %vm541_vm2 = vmor %vm539_vm1, %vm540_vm15 }
 0x60e   :  { %v535_v14 = vmul.f32 %v829_v1, %v534_v21  ;;  %v532_v22 = vsel %vm531_vm14, %v827_v12, %v528_v20 }
 0x60f   :  { %v543_v24 = vmul.f32 %v532_v22, %v519_v25 }
 0x610   :  { %v536_v23 = vmul.f32 0.5, %v535_v14 }
 0x611   :  { %v548_v32 = vmul.f32 %v784_v27, %v543_v24 }
 0x612   :  { %v537_v26 = vsub.f32 1.5, %v536_v23 }
 0x613   :  { %v553_v35 = vadd.f32 %v785_v33, %v548_v32 }
 0x614   :  { %v538_v28 = vmul.f32 %v829_v1, %v537_v26 }
 0x616   :  { %v542_v30 = vsel %vm541_vm2, %v829_v1, %v538_v28 }
 0x617   :  { %v544_v10 = vmul.f32 %v542_v30, %v520_v29 }
 0x619   :  { %v549_v34 = vmul.f32 %v784_v27, %v544_v10 }
 0x61b   :  { %v554_v36 = vadd.f32 %v785_v33, %v549_v34 }
 0x61d   :  { %v555_v37 = vpack.c.bf16 %v554_v36, %v553_v35 }
 0x61f   :  { %707 = vmatmul.msk.bf16.vlgmr.msra.gmra.mxu0 %vm53_vm0, %v555_v37 }
 0x69c   :  { %v588_v40 = vpop.f32.mrf.mxu0 }
 0x69d   :  { %v589_v41 = vadd.f32 %v786_v31, %v588_v40 }
 0x69f   :  { %v593_v44 = vmax.f32 %v589_v41, 0.0 }
 0x6a4   :  { %v590_v42 = vpop.f32.mrf.mxu0 }
 0x6a5   :  { %v591_v43 = vadd.f32 %v786_v31, %v590_v42 }
 0x6a7   :  { %v594_v45 = vmax.f32 %v591_v43, 0.0 }
 0x6a9   :  { %v595_v47 = vpack.c.bf16 %v594_v45, %v593_v44 }
 0x6ab   :  { %724 = vmatmul.msk.bf16.vlgmr.msrb.gmra.mxu3 %vm273_vm9, %v595_v47 }
 0x72e   :  { %v640_v49 = vpop.f32.mrf.mxu3 }
 0x72f   :  { %v645_v50 = vadd.f32 %v640_v49, %v1083_v46 }
 0x731   :  { %v651_v51 = vadd.f32 %v787_v48, %v645_v50 }
 0x733   :  { %653 = vst.msk [vmem:[#allocation2] sm:$0xff] %vm53_vm0, %v651_v51 }
 0x736   :  { %v642_v0 = vpop.f32.mrf.mxu3 }
 0x737   :  { %v646_v53 = vadd.f32 %v642_v0, %v1091_v52 }
 0x739   :  { %v652_v54 = vadd.f32 %v787_v48, %v646_v53 }
 0x73b   :  { %654 = vst.msk [vmem:[#allocation2 + $0x8] sm:$0xff] %vm53_vm0, %v652_v54 }
 0x73c   :  { %667 = dma.vmem_to_hbm [thread:$0]  %s660_s11, 256, %s662_s5, [#allocation3], %s866_s13, %s866_s13, %s862_s1  }
 0x73d   :  { %854 = dma.done.wait [#allocation3], 256  }
 0x73e   :  { %855 = vsyncadd [#allocation3], 4294967040 }
 0x73f   :  { %672 = vsyncpa [#allocation3], 1 }

</bundles_post_ra>
